<compile_context>
chip_gen: v7x
topology: tpu7x:2x2x1
jax: 0.10.0
libtpu: 0.0.40
codegen_flags: <defaults>
</compile_context>

<pallas_src>
import functools

import jax
import jax.numpy as jnp
from jax.experimental import pallas as pl
from jax.experimental.pallas import tpu as pltpu


# ----------------------------------------------------------------------------
# helpers
# ----------------------------------------------------------------------------
_VMEM_LIMIT = 48 * 1024 * 1024  # > default scoped limit everywhere, < v7x 64 MiB


def _round_up(x, m):
    return ((x + m - 1) // m) * m


def _cdiv(a, b):
    return -(-a // b)


def _batch_tile(B, cap):
    """Batch tile: full batch when small; otherwise a multiple-of-8 tile <= cap
    chosen so the batch grid has >= 2 steps (keeps both v7x TensorCores busy).
    Non-dividing batches are handled by a cdiv grid + masked partial block."""
    if B < 16:
        return B
    t = min(cap, _round_up((B + 1) // 2, 8))
    return max(8, (t // 8) * 8)


def _cparams(vmem=True, dims=("parallel",)):
    kw = dict(dimension_semantics=dims)
    if vmem:
        kw["vmem_limit_bytes"] = _VMEM_LIMIT
    return pltpu.CompilerParams(**kw)


# ----------------------------------------------------------------------------
# kernel: fused linear  y = act(x @ W + b)   (tiled over M, bf16 MXU operands,
# bf16 writeback, no input padding copy — partial last block is masked)
# ----------------------------------------------------------------------------
def _linear_kernel(x_ref, w_ref, b_ref, o_ref, *, activation):
    y = jnp.dot(x_ref[...], w_ref[...], preferred_element_type=jnp.float32)
    y = y + b_ref[...]
    if activation == "tanh":
        y = jnp.tanh(y)
    o_ref[...] = y.astype(o_ref.dtype)


def pallas_linear(x, w, b, activation="none", tm=256, out_dtype=jnp.bfloat16):
    M, K = x.shape
    N = w.shape[1]
    bf16 = jnp.bfloat16
    tm_eff = M if M <= tm else tm          # full block (any M) or mult-of-8 tile
    grid = (_cdiv(M, tm_eff),)

    return pl.pallas_call(
        functools.partial(_linear_kernel, activation=activation),
        out_shape=jax.ShapeDtypeStruct((M, N), out_dtype),
        grid=grid,
        in_specs=[pl.BlockSpec((tm_eff, K), lambda i: (i, 0)),
                  pl.BlockSpec((K, N), lambda i: (0, 0)),
                  pl.BlockSpec((1, N), lambda i: (0, 0))],
        out_specs=pl.BlockSpec((tm_eff, N), lambda i: (i, 0)),
        compiler_params=_cparams(),
    )(x.astype(bf16), w.astype(bf16), b.astype(jnp.float32))


# ----------------------------------------------------------------------------
# kernel: LSTM — time is a grid axis, h/c carried in VMEM scratch.
# Emulates pack_padded_sequence: padded steps output 0, hidden frozen at length.
# ----------------------------------------------------------------------------
def _lstm_step_kernel(xw_ref, lens_ref, whh_ref, *rest, with_seq):
    if with_seq:
        seq_ref, hlast_ref, h_sc, c_sc = rest
    else:
        hlast_ref, h_sc, c_sc = rest
        seq_ref = None

    f32 = jnp.float32
    t = pl.program_id(1)
    H = h_sc.shape[-1]

    @pl.when(t == 0)
    def _():
        h_sc[...] = jnp.zeros_like(h_sc)
        c_sc[...] = jnp.zeros_like(c_sc)

    h = h_sc[...]
    c = c_sc[...]
    # bf16 MXU recurrent matmul, f32 accumulate; xw slab streamed per step
    gates = xw_ref[0].astype(f32) + jnp.dot(
        h.astype(jnp.bfloat16), whh_ref[...], preferred_element_type=f32)
    i_g = jax.nn.sigmoid(gates[:, 0 * H:1 * H])
    f_g = jax.nn.sigmoid(gates[:, 1 * H:2 * H])
    g_g = jnp.tanh(gates[:, 2 * H:3 * H])
    o_g = jax.nn.sigmoid(gates[:, 3 * H:4 * H])
    c_new = f_g * c + i_g * g_g
    h_new = o_g * jnp.tanh(c_new)

    mask = (lens_ref[...] > t).astype(f32)            # (tb, 1)
    h_out = mask * h_new + (1.0 - mask) * h
    c_out = mask * c_new + (1.0 - mask) * c
    h_sc[...] = h_out
    c_sc[...] = c_out
    hlast_ref[...] = h_out.astype(hlast_ref.dtype)    # resident block; final
    if with_seq:
        seq_ref[0] = (mask * h_new).astype(seq_ref.dtype)   # zeros at padding


def pallas_lstm(x, lens, p, need_seq=True, tb_cap=256):
    B, T, I = x.shape
    H = p["whh"].shape[0]
    bf16 = jnp.bfloat16

    # one big (T*B, I) @ (I, 4H) matmul instead of T per-step matmuls; time-major
    # so the recurrent kernel can stream one contiguous (tb, 4H) slab per step.
    x_tm = jnp.swapaxes(x, 0, 1).reshape(T * B, I)
    xw = pallas_linear(x_tm, p["wih"], p["b"], activation="none",
                       out_dtype=bf16).reshape(T, B, 4 * H)
    lens2 = lens.reshape(B, 1).astype(jnp.int32)
    whh = p["whh"].astype(bf16)

    tb = _batch_tile(B, tb_cap)
    nb = _cdiv(B, tb)

    out_shape = [jax.ShapeDtypeStruct((B, H), bf16)]
    out_specs = [pl.BlockSpec((tb, H), lambda i, t: (i, 0))]
    if need_seq:
        out_shape = [jax.ShapeDtypeStruct((T, B, H), bf16)] + out_shape
        out_specs = [pl.BlockSpec((1, tb, H), lambda i, t: (t, i, 0))] + out_specs

    outs = pl.pallas_call(
        functools.partial(_lstm_step_kernel, with_seq=need_seq),
        out_shape=tuple(out_shape),
        grid=(nb, T),
        in_specs=[pl.BlockSpec((1, tb, 4 * H), lambda i, t: (t, i, 0)),
                  pl.BlockSpec((tb, 1), lambda i, t: (i, 0)),
                  pl.BlockSpec((H, 4 * H), lambda i, t: (0, 0))],
        out_specs=tuple(out_specs),
        scratch_shapes=[pltpu.VMEM((tb, H), jnp.float32),
                        pltpu.VMEM((tb, H), jnp.float32)],
        compiler_params=_cparams(dims=("parallel", "arbitrary")),
    )(xw, lens2, whh)

    if need_seq:
        seq_tm, hlast = outs
        return jnp.swapaxes(seq_tm, 0, 1), hlast      # (B, T, H), (B, H)
    hlast = outs[0] if isinstance(outs, (tuple, list)) else outs
    return None, hlast


# ----------------------------------------------------------------------------
# kernel: the whole recursive() block fused into one pallas_call
#   - attention params stacked along a leading dim of 3: [attq, atth, atti]
#   - combine (Attention_c x3) stacked into one (3H, 3H) block matrix
#   - fc1 fused at the end (weight zero-padded to a lane-dense output width)
# ----------------------------------------------------------------------------
def _recursive_kernel(qf_ref, hf_ref, if_ref, wf_ref, wg1_ref, wg2_ref,
                      ws_ref, bs_ref, wcomb_ref, bcomb_ref, fcw_ref, fcb_ref,
                      enc_ref, wh3_ref):
    f32 = jnp.float32
    bf16 = jnp.bfloat16
    qf = qf_ref[...]                          # (tb, Tq, H)  bf16
    hf = hf_ref[...]                          # (tb, rnd, H) bf16
    imf = if_ref[...]                         # (tb, 36, H)  bf16
    H = qf.shape[-1]
    rnd = hf.shape[1]

    # hoisted feature projections: computed once, reused across all 3 stages.
    # (reshape+2D dot: rank-3 x rank-2 dot_general is not lowerable on Mosaic)
    def project(feat, wf):
        b, n, h = feat.shape
        p2 = jnp.dot(feat.reshape(b * n, h), wf, preferred_element_type=f32)
        return p2.astype(bf16).reshape(b, n, h)

    proj_q = project(qf, wf_ref[0])
    proj_h = project(hf, wf_ref[1])
    proj_i = project(imf, wf_ref[2])

    wcomb = wcomb_ref[...]                    # (3H, 3H) bf16
    bcomb = bcomb_ref[...]                    # (1, 3H)  f32

    def attend(k, proj, feat, g1, g2):
        add = proj
        if g1 is not None:
            guide = jnp.dot(g1.astype(bf16), wg1_ref[k], preferred_element_type=f32)
            if g2 is not None:
                guide = guide + jnp.dot(g2.astype(bf16), wg2_ref[k],
                                        preferred_element_type=f32)
            add = proj + guide.astype(bf16)[:, None, :]
        hidden = jnp.tanh(add)                                          # bf16 EUP
        score = jnp.sum((hidden * ws_ref[k]).astype(f32), axis=-1) + bs_ref[k]
        m = jnp.max(score, axis=-1, keepdims=True)
        e = jnp.exp(score - m)
        p = e * pl.reciprocal(jnp.sum(e, axis=-1, keepdims=True), approx=True)
        # VPU weighted sum (N<=36) instead of an M=1 MXU matmul
        att = jnp.sum(p[:, :, None] * feat.astype(f32), axis=1)         # (tb, H)
        return p, att

    def combine(qg, ig, hg):
        # one (tb,3H)@(3H,3H) matmul; output columns are [q | v | h]
        cat = jnp.concatenate([qg, ig, hg], axis=1).astype(bf16)
        return jnp.tanh(jnp.dot(cat, wcomb, preferred_element_type=f32) + bcomb)

    # ---- stage 1
    _, q_g = attend(0, proj_q, qf, None, None)
    _, h_g = attend(1, proj_h, hf, q_g, None)
    _, i_g = attend(2, proj_i, imf, q_g, h_g)
    c1 = combine(q_g, i_g, h_g)
    q_g, i_g, h_g = c1[:, 0:H], c1[:, H:2 * H], c1[:, 2 * H:3 * H]

    # ---- stage 2
    _, q2 = attend(0, proj_q, qf, i_g, h_g)
    _, h2 = attend(1, proj_h, hf, q2, i_g)
    _, i2 = attend(2, proj_i, imf, q2, h2)
    q2 = 0.5 * (q_g + q2)
    i2 = 0.5 * (i_g + i2)
    h2 = 0.5 * (h_g + h2)
    c2 = combine(q2, i2, h2)
    q_g, i_g, h_g = c2[:, 0:H], c2[:, H:2 * H], c2[:, 2 * H:3 * H]

    # ---- stage 3
    _, q3 = attend(0, proj_q, qf, i_g, h_g)
    wh3, h3 = attend(1, proj_h, hf, q3, i_g)
    _, i3 = attend(2, proj_i, imf, q3, h3)
    q3 = 0.5 * (q_g + q3)
    i3 = 0.5 * (i_g + i3)
    h3 = 0.5 * (h_g + h3)
    c3 = combine(q3, i3, h3)                  # == concat([q, v, h], axis=1)

    # fused fc1 (+ tanh); dropout(training=False) is identity.
    # fcw/fcb are zero-padded in the wrapper -> lane-dense unmasked stores.
    enc = jnp.tanh(jnp.dot(c3.astype(bf16), fcw_ref[...],
                           preferred_element_type=f32) + fcb_ref[...])
    enc_ref[...] = enc.astype(enc_ref.dtype)

    pad = wh3_ref.shape[-1] - rnd
    if pad:
        wh3 = jnp.concatenate([wh3, jnp.zeros((wh3.shape[0], pad), f32)], axis=1)
    wh3_ref[...] = wh3.astype(wh3_ref.dtype)


def _stack_combine(pq, pv, ph):
    """Build the (3H,3H) block matrix so that with input [ques|img|his] the
    output columns are [q|v|h], matching attq_c/atti_c/atth_c call order."""
    row_q = jnp.concatenate([pq["wa"], pv["wb"], ph["wb"]], axis=1)
    row_i = jnp.concatenate([pq["wb"], pv["wa"], ph["wc"]], axis=1)
    row_h = jnp.concatenate([pq["wc"], pv["wc"], ph["wa"]], axis=1)
    w = jnp.concatenate([row_q, row_i, row_h], axis=0)                 # (3H, 3H)
    b = jnp.concatenate([pq["bias"], pv["bias"], ph["bias"]], axis=1)  # (1, 3H)
    return w, b


def pallas_recursive(params, ques_feat, his_feat, img_feat):
    H = params["nhid"]
    B, Tq, _ = ques_feat.shape
    _, rnd, _ = his_feat.shape
    _, Nr, _ = img_feat.shape
    ninp = params["fc1"]["w"].shape[1]
    ninp_p = _round_up(ninp, 128)             # lane-dense output widths
    rnd_p = _round_up(rnd, 128)
    bf16 = jnp.bfloat16

    attq, atth, atti = params["attq"], params["atth"], params["atti"]
    wf_all = jnp.stack([attq["wf"], atth["wf"], atti["wf"]]).astype(bf16)
    wg1_all = jnp.stack([attq["wg1"], atth["wg1"], atti["wg1"]]).astype(bf16)
    wg2_all = jnp.stack([attq["wg2"], atth["wg2"], atti["wg2"]]).astype(bf16)
    ws_all = jnp.stack([attq["ws"], atth["ws"], atti["ws"]]).astype(bf16)
    bs_all = jnp.stack([attq["bs"][0, 0], atth["bs"][0, 0],
                        atti["bs"][0, 0]]).astype(jnp.float32)         # (3,) SMEM
    wcomb, bcomb = _stack_combine(params["attq_c"], params["atti_c"],
                                  params["atth_c"])
    wcomb = wcomb.astype(bf16)
    fcw = jnp.pad(params["fc1"]["w"],
                  ((0, 0), (0, ninp_p - ninp))).astype(bf16)           # (3H, ninp_p)
    fcb = jnp.pad(params["fc1"]["b"], ((0, 0), (0, ninp_p - ninp)))    # (1, ninp_p)

    # NOTE: invariant-weight BlockSpecs could be single-buffered (pl.Buffered(1))
    # to shave further VMEM on v7x; bf16 + tb<=64 already fits the 48 MiB budget.
    tb = _batch_tile(B, 64)
    nb = _cdiv(B, tb)

    enc, wh3 = pl.pallas_call(
        _recursive_kernel,
        out_shape=(jax.ShapeDtypeStruct((B, ninp_p), jnp.float32),
                   jax.ShapeDtypeStruct((B, rnd_p), jnp.float32)),
        grid=(nb,),
        in_specs=[
            pl.BlockSpec((tb, Tq, H), lambda i: (i, 0, 0)),
            pl.BlockSpec((tb, rnd, H), lambda i: (i, 0, 0)),
            pl.BlockSpec((tb, Nr, H), lambda i: (i, 0, 0)),
            pl.BlockSpec((3, H, H), lambda i: (0, 0, 0)),
            pl.BlockSpec((3, H, H), lambda i: (0, 0, 0)),
            pl.BlockSpec((3, H, H), lambda i: (0, 0, 0)),
            pl.BlockSpec((3, 1, H), lambda i: (0, 0, 0)),
            pl.BlockSpec(memory_space=pltpu.MemorySpace.SMEM),          # bs (3,)
            pl.BlockSpec((3 * H, 3 * H), lambda i: (0, 0)),
            pl.BlockSpec((1, 3 * H), lambda i: (0, 0)),
            pl.BlockSpec((3 * H, ninp_p), lambda i: (0, 0)),
            pl.BlockSpec((1, ninp_p), lambda i: (0, 0)),
        ],
        out_specs=(pl.BlockSpec((tb, ninp_p), lambda i: (i, 0)),
                   pl.BlockSpec((tb, rnd_p), lambda i: (i, 0))),
        compiler_params=_cparams(),
    )(ques_feat.astype(bf16), his_feat.astype(bf16), img_feat.astype(bf16),
      wf_all, wg1_all, wg2_all, ws_all, bs_all,
      wcomb, bcomb, fcw, fcb)
    return enc[:, :ninp], wh3[:, :rnd]


# ----------------------------------------------------------------------------
# parameter init (deterministic, synthetic)
# ----------------------------------------------------------------------------
def _normal(key, shape, scale=0.1):
    return scale * jax.random.normal(key, shape, dtype=jnp.float32)


def _attn_params(key, H):
    k = jax.random.split(key, 4)
    return dict(wf=_normal(k[0], (H, H)), wg1=_normal(k[1], (H, H)),
                wg2=_normal(k[2], (H, H)), ws=_normal(k[3], (1, H)),
                bs=jnp.zeros((1, 1), jnp.float32))


def _combine_params(key, H):
    k = jax.random.split(key, 3)
    return dict(wa=_normal(k[0], (H, H)), wb=_normal(k[1], (H, H)),
                wc=_normal(k[2], (H, H)), bias=jnp.zeros((1, H), jnp.float32))


def _lstm_params(key, I, H):
    k = jax.random.split(key, 2)
    return dict(wih=_normal(k[0], (I, 4 * H)), whh=_normal(k[1], (H, 4 * H)),
                b=jnp.zeros((1, 4 * H), jnp.float32))  # b_ih + b_hh combined


def init_netE_params(key, ninp, nhid, img_feat_size):
    ks = jax.random.split(key, 12)
    return dict(
        nhid=nhid, ninp=ninp,
        img_embed=dict(v=_normal(ks[0], (nhid, img_feat_size)),      # weight_norm v
                       g=jnp.abs(_normal(ks[1], (nhid,))) + 0.5,     # weight_norm g
                       b=jnp.zeros((1, nhid), jnp.float32)),
        ques_rnn=_lstm_params(ks[2], ninp, nhid),
        his_rnn=_lstm_params(ks[3], ninp, nhid),
        attq=_attn_params(ks[4], nhid),
        atti=_attn_params(ks[5], nhid),
        atth=_attn_params(ks[6], nhid),
        attq_c=_combine_params(ks[7], nhid),
        atti_c=_combine_params(ks[8], nhid),
        atth_c=_combine_params(ks[9], nhid),
        fc1=dict(w=_normal(ks[10], (3 * nhid, ninp)),
                 b=jnp.zeros((1, ninp), jnp.float32)),
    )


# ----------------------------------------------------------------------------
# forward pass (mirrors _netE.forward / _netE.recursive)
# ----------------------------------------------------------------------------
def netE_forward(params, ques_emb, his_emb, img_raw, ques_input, his_input, rnd):
    nhid = params["nhid"]
    B, R, F = img_raw.shape  # (batch, 36, img_feat_size)

    # weight_norm(nn.Linear): effective W = g * v / ||v||_row (tiny glue in XLA)
    v = params["img_embed"]["v"]
    g = params["img_embed"]["g"]
    w_eff = (g[:, None] * v / jnp.linalg.norm(v, axis=1, keepdims=True)).T  # (F, nhid)
    img_f = pallas_linear(img_raw.reshape(B * R, F), w_eff,
                          params["img_embed"]["b"], activation="tanh")
    img_f = img_f.reshape(-1, 36, nhid)

    quesL = jnp.sum((ques_input != 0).astype(jnp.int32), axis=1)
    ques_f, _ques_hidden = pallas_lstm(ques_emb, quesL, params["ques_rnn"],
                                       need_seq=True)

    hisL = jnp.sum((his_input != 0).astype(jnp.int32), axis=1)
    _, his_h = pallas_lstm(his_emb, hisL, params["his_rnn"], need_seq=False)
    his_f = his_h.reshape(-1, rnd, nhid)

    return pallas_recursive(params, ques_f, his_f, img_f)


# ----------------------------------------------------------------------------
# demo
# ----------------------------------------------------------------------------
if __name__ == "__main__":
    # small, shape-consistent sizes
    B, rnd = 2, 2
    ninp, nhid, img_feat_size = 16, 32, 64
    Tq, Th, Nregions = 8, 6, 36

    key = jax.random.PRNGKey(0)
    kp, k1, k2, k3 = jax.random.split(key, 4)

    params = init_netE_params(kp, ninp, nhid, img_feat_size)

    ques_emb = jax.random.normal(k1, (B, Tq, ninp), dtype=jnp.float32)
    his_emb = jax.random.normal(k2, (B * rnd, Th, ninp), dtype=jnp.float32)
    img_raw = jax.random.normal(k3, (B, Nregions, img_feat_size), dtype=jnp.float32)

    # token-id inputs only used for length computation (nonzero = valid token)
    ques_lens = jnp.array([6, 8], dtype=jnp.int32)
    ques_input = (jnp.arange(Tq)[None, :] < ques_lens[:, None]).astype(jnp.int32) * 5
    his_lens = jnp.array([4, 6, 3, 5], dtype=jnp.int32)
    his_input = (jnp.arange(Th)[None, :] < his_lens[:, None]).astype(jnp.int32) * 7

    encoder_feat, att_h = netE_forward(params, ques_emb, his_emb, img_raw,
                                       ques_input, his_input, rnd)
    jax.block_until_ready(encoder_feat)
    jax.block_until_ready(att_h)

    assert encoder_feat.shape == (B, ninp)
    assert att_h.shape == (B, rnd)
    print("KERNEL_OK")
</pallas_src>

<mosaic_0001>
module attributes {stable_mosaic.version = 11 : i64} {
  func.func @_linear_kernel(%arg0: i32, %arg1: memref<72x64xbf16, #tpu.memory_space<vmem>>, %arg2: memref<64x32xbf16, #tpu.memory_space<vmem>>, %arg3: memref<1x32xf32, #tpu.memory_space<vmem>>, %arg4: memref<72x32xbf16, #tpu.memory_space<vmem>>) attributes {dimension_semantics = [#tpu.dimension_semantics<parallel>], iteration_bounds = array<i64: 1>, scalar_prefetch = 0 : i64, scratch_operands = 0 : i64, tpu.core_type = #tpu.core_type<tc>, window_params = [{transform_indices = @transform_0, window_bounds = array<i64: 72, 64>}, {pipeline_mode = #tpu.pipeline_mode<synchronous>, transform_indices = @transform_1, window_bounds = array<i64: 64, 32>}, {pipeline_mode = #tpu.pipeline_mode<synchronous>, transform_indices = @transform_2, window_bounds = array<i64: 1, 32>}, {transform_indices = @transform_3, window_bounds = array<i64: 72, 32>}]} {
    %c0 = arith.constant 0 : index
    %c0_0 = arith.constant 0 : index
    %0 = vector.load %arg1[%c0, %c0_0] : memref<72x64xbf16, #tpu.memory_space<vmem>>, vector<72x64xbf16>
    %c0_1 = arith.constant 0 : index
    %c0_2 = arith.constant 0 : index
    %1 = vector.load %arg2[%c0_1, %c0_2] : memref<64x32xbf16, #tpu.memory_space<vmem>>, vector<64x32xbf16>
    %cst = arith.constant dense<0.000000e+00> : vector<72x32xf32>
    %2 = tpu.matmul %0, %1, %cst {dimension_numbers = #tpu.dot_dimension_numbers<[1], [0], [0], [1], [0, 0, 1, 1], [], []>} : vector<72x64xbf16>, vector<64x32xbf16>, vector<72x32xf32> -> vector<72x32xf32>
    %c0_3 = arith.constant 0 : index
    %c0_4 = arith.constant 0 : index
    %3 = vector.load %arg3[%c0_3, %c0_4] : memref<1x32xf32, #tpu.memory_space<vmem>>, vector<1x32xf32>
    %4 = vector.broadcast %3 : vector<1x32xf32> to vector<72x32xf32>
    %5 = arith.addf %2, %4 : vector<72x32xf32>
    %6 = math.tanh %5 : vector<72x32xf32>
    %7 = arith.truncf %6 : vector<72x32xf32> to vector<72x32xbf16>
    %c0_5 = arith.constant 0 : index
    %c0_6 = arith.constant 0 : index
    %8 = vector.load %arg4[%c0_5, %c0_6] : memref<72x32xbf16, #tpu.memory_space<vmem>>, vector<72x32xbf16>
    tpu.vector_store %arg4[%c0_5, %c0_6], %7 {strides = array<i32>} : memref<72x32xbf16, #tpu.memory_space<vmem>>, vector<72x32xbf16>,
    return
  }
  func.func @transform_0(%arg0: i32) -> (i32, i32) {
    %c0_i32 = arith.constant 0 : i32
    %c0_i32_0 = arith.constant 0 : i32
    return %arg0, %c0_i32 : i32, i32
  }
  func.func @transform_1(%arg0: i32) -> (i32, i32) {
    %c0_i32 = arith.constant 0 : i32
    %c0_i32_0 = arith.constant 0 : i32
    %c0_i32_1 = arith.constant 0 : i32
    return %c0_i32, %c0_i32_0 : i32, i32
  }
  func.func @transform_2(%arg0: i32) -> (i32, i32) {
    %c0_i32 = arith.constant 0 : i32
    %c0_i32_0 = arith.constant 0 : i32
    %c0_i32_1 = arith.constant 0 : i32
    return %c0_i32, %c0_i32_0 : i32, i32
  }
  func.func @transform_3(%arg0: i32) -> (i32, i32) {
    %c0_i32 = arith.constant 0 : i32
    %c0_i32_0 = arith.constant 0 : i32
    return %arg0, %c0_i32 : i32, i32
  }
}

</mosaic_0001>

<bundles_post_ra>
// kernel: tpu_custom_call.1
= control target key start
LH: loop header
LB: loop body
LE: loop exit
PB: predicated region body
PF: predicated region fallthrough
CT: control target
= control target key end

     0   :  { %v341_v0 = vmov 0.0   ;;  %vm342_vm0 = vmmov 0   ;;  %vm86_vm1 = vcmask 523264   ;;  %vm220_vm2 = vcmask 257024   ;;  %s434_s1 = inlined_call_operand.vmem [shape: bf16[64,32], index: 1, kind: input, shape index: {}]   ;;  %s435_s0 = inlined_call_operand.vmem [shape: bf16[72,64], index: 0, kind: input, shape index: {}]   ;;  %s436_s2 = inlined_call_operand.vmem [shape: f32[1,32], index: 2, kind: input, shape index: {}]   ;;  %s437_s3 = inlined_call_operand.vmem [shape: bf16[72,32], index: 3, kind: output, shape index: {}]  }
   0x1   :  { %276 = vmatprep.subr.bf16.mxu0 %v341_v0  ;;  %v314_v1 = vld [vmem:[%s434_s1] sm:$0xff]   ;;  %304 = vmatprep.subr.bf16.mxu1 %v341_v0  ;;  %v315_v2 = vld [vmem:[%s434_s1 + $0x8] sm:$0xff]   ;;  %v316_v3 = vld [vmem:[%s434_s1 + $0x10] sm:$0xff]  }
   0x2   :  { %284 = vmatprep.mubr.msk.bf16.mxu0 %vm342_vm0, %v341_v0  ;;  %296 = vmatprep.mubr.msk.bf16.mxu1 %vm342_vm0, %v341_v0  ;;  %v317_v4 = vld [vmem:[%s434_s1 + $0x18] sm:$0xff]   ;;  %v318_v5 = vld [vmem:[%s435_s0] sm:$0xff]   ;;  %v320_v7 = vld [vmem:[%s435_s0 + $0x8] sm:$0xff]  }
   0x3   :  { %277 = vmatpush3.bf16.msra.mxu0 %v314_v1  ;;  %308 = vmatpush3.bf16.msra.mxu1 %v314_v1  ;;  %v319_v6 = vld [vmem:[%s435_s0 + $0x18] sm:$0xff]   ;;  %v321_v8 = vld [vmem:[%s435_s0 + $0x20] ss:$0 sps:$4 sm:$0xff]   ;;  %v322_v9 = vld [vmem:[%s435_s0 + $0x10] sm:$0xff]  }
   0x4   :  { %278 = vmatprep.subr.bf16.mxu0 %v341_v0  ;;  %305 = vmatprep.subr.bf16.mxu1 %v341_v0  ;;  %v234_v10 = vld [vmem:[%s436_s2] ss:$0 sm:$0xff] }
   0x7   :  { %279 = vmatpush3.bf16.msra.mxu0 %v315_v2  ;;  %309 = vmatpush3.bf16.msra.mxu1 %v315_v2 }
   0x8   :  { %280 = vmatprep.subr.bf16.mxu0 %v341_v0  ;;  %306 = vmatprep.subr.bf16.mxu1 %v341_v0 }
   0xb   :  { %281 = vmatpush3.bf16.msra.mxu0 %v316_v3  ;;  %310 = vmatpush3.bf16.msra.mxu1 %v316_v3 }
   0xc   :  { %282 = vmatprep.subr.bf16.mxu0 %v341_v0  ;;  %307 = vmatprep.subr.bf16.mxu1 %v341_v0 }
   0xf   :  { %283 = vmatpush3.bf16.msra.mxu0 %v317_v4  ;;  %311 = vmatpush3.bf16.msra.mxu1 %v317_v4 }
  0x12   :  { %285 = vmatmul.mubr.msk.bf16.vlgmr.msra.gmra.mrb[0].mxu0 %vm86_vm1, %v318_v5  ;;  %297 = vmatmul.mubr.msk.bf16.vlgmr.msra.gmra.mrb[0].mxu1 %vm86_vm1, %v319_v6 }
  0x13   :  { %288 = vmatprep.mubr.msk.bf16.mxu0 %vm342_vm0, %v341_v0  ;;  %300 = vmatprep.mubr.msk.bf16.mxu1 %vm342_vm0, %v341_v0 }
  0x1a   :  { %289 = vmatmul.mubr.msk.bf16.gmra.mrb[4].mxu0 %vm86_vm1, %v320_v7  ;;  %301 = vmatmul.mubr.msk.bf16.gmra.mrb[4].mxu1 %vm86_vm1, %v321_v8 }
  0x1b   :  { %292 = vmatprep.mubr.msk.bf16.mxu0 %vm342_vm0, %v341_v0 }
  0x22   :  { %293 = vmatmul.mubr.msk.bf16.gmra.mrb[8].mxu0 %vm86_vm1, %v322_v9 }
  0xe5   :  { %v136_v11 = vpop.f32.mrb[0].mxu0  ;;  %v160_v12 = vpop.f32.mrb[0].mxu1 }
  0xe6   :  { %v137_v13 = vadd.f32 %v234_v10, %v136_v11  ;;  %v286_v14 = vpop.f32.mrb[1].mxu0  ;;  %v161_v15 = vadd.f32 %v234_v10, %v160_v12  ;;  %v298_v16 = vpop.f32.mrb[1].mxu1 }
  0xe7   :  { %v139_v17 = vpop.f32.mrb[2].mxu0  ;;  %v163_v18 = vpop.f32.mrb[2].mxu1 }
  0xe8   :  { %323 = vtanh.f32 %v137_v13  ;;  %v140_v19 = vadd.f32 %v234_v10, %v139_v17  ;;  %v287_v20 = vpop.f32.mrb[3].mxu0  ;;  %v164_v21 = vadd.f32 %v234_v10, %v163_v18  ;;  %v299_v22 = vpop.f32.mrb[3].mxu1 }
  0xe9   :  { %325 = vtanh.f32 %v161_v15 }
  0xea   :  { %327 = vtanh.f32 %v140_v19 }
  0xeb   :  { %329 = vtanh.f32 %v164_v21 }
  0xed   :  { %v144_v23 = vpop.f32.mrb[4].mxu0  ;;  %v168_v24 = vpop.f32.mrb[4].mxu1 }
  0xee   :  { %v145_v25 = vadd.f32 %v234_v10, %v144_v23  ;;  %v290_v26 = vpop.f32.mrb[5].mxu0  ;;  %v169_v27 = vadd.f32 %v234_v10, %v168_v24  ;;  %v302_v28 = vpop.f32.mrb[5].mxu1 }
  0xef   :  { %v147_v29 = vpop.f32.mrb[6].mxu0  ;;  %v171_v30 = vpop.f32.mrb[6].mxu1 }
  0xf0   :  { %331 = vtanh.f32 %v145_v25  ;;  %v148_v31 = vadd.f32 %v234_v10, %v147_v29  ;;  %v291_v32 = vpop.f32.mrb[7].mxu0  ;;  %v303_v33 = vpop.f32.mrb[7].mxu1 }
  0xf1   :  { %333 = vtanh.f32 %v169_v27 }
  0xf2   :  { %v324_v34 = vpop.eup %323  ;;  %335 = vtanh.f32 %v148_v31 }
  0xf3   :  { %v326_v35 = vpop.eup %325  ;;  %v258_v36 = vpack.c.bf16 %v324_v34, %v324_v34 }
  0xf4   :  { %v328_v37 = vpop.eup %327  ;;  %v264_v38 = vpack.c.bf16 %v326_v35, %v326_v35 }
  0xf5   :  { %v330_v39 = vpop.eup %329  ;;  %221 = vst.msk [vmem:[%s437_s3] sm:$0xf] %vm220_vm2, %v258_v36  ;;  %v259_v40 = vpack.c.bf16 %v328_v37, %v328_v37  ;;  %v152_v41 = vpop.f32.mrb[8].mxu0 }
  0xf6   :  { %227 = vst.msk [vmem:[%s437_s3 + $0x18] sm:$0xf] %vm220_vm2, %v264_v38  ;;  %v265_v42 = vpack.c.bf16 %v330_v39, %v330_v39  ;;  %v153_v43 = vadd.f32 %v234_v10, %v152_v41  ;;  %v294_v44 = vpop.f32.mrb[9].mxu0 }
  0xf7   :  { %222 = vst.msk [vmem:[%s437_s3 + $0x4] sm:$0xf] %vm220_vm2, %v259_v40  ;;  %v155_v45 = vpop.f32.mrb[10].mxu0 }
  0xf8   :  { %228 = vst.msk [vmem:[%s437_s3 + $0x1c] sm:$0xf] %vm220_vm2, %v265_v42  ;;  %337 = vtanh.f32 %v153_v43  ;;  %v156_v46 = vadd.f32 %v234_v10, %v155_v45  ;;  %v295_v47 = vpop.f32.mrb[11].mxu0 }
  0xfa   :  { %v332_v48 = vpop.eup %331  ;;  %339 = vtanh.f32 %v156_v46 }
  0xfb   :  { %v334_v49 = vpop.eup %333  ;;  %v260_v50 = vpack.c.bf16 %v332_v48, %v332_v48 }
  0xfc   :  { %v336_v51 = vpop.eup %335  ;;  %v266_v52 = vpack.c.bf16 %v334_v49, %v334_v49 }
  0xfd   :  { %223 = vst.msk [vmem:[%s437_s3 + $0x8] sm:$0xf] %vm220_vm2, %v260_v50  ;;  %v261_v53 = vpack.c.bf16 %v336_v51, %v336_v51 }
  0xfe   :  { %229 = vst.msk [vmem:[%s437_s3 + $0x20] sm:$0xf] %vm220_vm2, %v266_v52 }
  0xff   :  { %224 = vst.msk [vmem:[%s437_s3 + $0xc] sm:$0xf] %vm220_vm2, %v261_v53 }
 0x102   :  { %v338_v54 = vpop.eup %337 }
 0x103   :  { %v262_v55 = vpack.c.bf16 %v338_v54, %v338_v54 }
 0x104   :  { %v340_v56 = vpop.eup %339 }
 0x105   :  { %225 = vst.msk [vmem:[%s437_s3 + $0x10] sm:$0xf] %vm220_vm2, %v262_v55  ;;  %v263_v57 = vpack.c.bf16 %v340_v56, %v340_v56 }
 0x107   :  { %226 = vst.msk [vmem:[%s437_s3 + $0x14] sm:$0xf] %vm220_vm2, %v263_v57 }

</bundles_post_ra>
